<compile_context>
chip_gen: v6e
topology: v6e:2x2x1
jax: 0.10.0
libtpu: 0.0.40
codegen_flags: <defaults>
</compile_context>

<pallas_src>
import functools

import jax
import jax.numpy as jnp
from jax.experimental import pallas as pl
from jax.experimental.pallas import tpu as pltpu


def _round_up(x, m):
    return ((x + m - 1) // m) * m


def _relu_in_bf16_default():
    """bf16 VALU exists on v6e/v7x; keep elementwise ReLU in f32 on older gens."""
    try:
        kind = jax.devices()[0].device_kind.lower()
    except Exception:
        return False
    if "tpu" not in kind:
        return False
    return not any(v in kind for v in ("v2", "v3", "v4", "v5"))


# ---------------------------------------------------------------------------
# Kernel
# ---------------------------------------------------------------------------
def _resnetfc_kernel(x_ref, w_in_ref, b_in_ref,
                     w0_ref, b0_ref, w1_ref, b1_ref,
                     w_out_ref, b_out_ref, o_ref, *, n_blocks, relu_in_bf16):
    mx_dtype = w0_ref.dtype

    def act(h):
        # ReLU feeding an MXU input.  On v6e/v7x cast first and do the max in
        # bf16 (halves VPU vreg passes); elsewhere max in f32 then cast.
        if relu_in_bf16:
            return jnp.maximum(h.astype(mx_dtype), 0.0)
        return jnp.maximum(h, 0.0).astype(mx_dtype)

    x = x_ref[...]                                                # (TM, d_in) f32

    # lin_in (fully f32: tiny K, negligible on the MXU, better input precision).
    h = jnp.dot(x, w_in_ref[...], preferred_element_type=jnp.float32)
    h = h + b_in_ref[...]                                         # (TM, d_hidden) f32

    # n_blocks x ResnetBlockFC (size_in == size_out -> identity shortcut).
    # Static unroll keeps full LLO scheduler visibility.
    for i in range(n_blocks):
        net = jnp.dot(act(h), w0_ref[i],
                      preferred_element_type=jnp.float32) + b0_ref[i]
        dx = jnp.dot(act(net), w1_ref[i],
                     preferred_element_type=jnp.float32) + b1_ref[i]
        h = h + dx                                                # f32 residual

    # lin_out(relu(h)); narrow (TM, d_out) store, masked vst is negligible vs
    # the matmuls and avoids 32x HBM write amplification + post-kernel slice.
    out = jnp.dot(act(h), w_out_ref[...],
                  preferred_element_type=jnp.float32) + b_out_ref[...]
    o_ref[...] = out.astype(o_ref.dtype)


# ---------------------------------------------------------------------------
# Wrapper
# ---------------------------------------------------------------------------
def resnetfc_forward(zx, params, *, tm=2048, weight_dtype=jnp.bfloat16,
                     relu_in_bf16=None):
    """zx: (..., d_in) float32 -> (..., d_out) float32."""
    (w_in, b_in, w0, b0, w1, b1, w_out, b_out) = params
    d_in = zx.shape[-1]
    d_hidden = w_in.shape[1]
    d_out = w_out.shape[1]
    n_blocks = w0.shape[0]

    if relu_in_bf16 is None:
        relu_in_bf16 = _relu_in_bf16_default() and weight_dtype == jnp.bfloat16

    lead_shape = zx.shape[:-1]
    x = zx.reshape(-1, d_in).astype(jnp.float32)
    n = x.shape[0]

    # Row tile: multiple of 8 sublanes, clamped to the (sublane-rounded) problem
    # size.  When there is enough work, cap the tile so the grid has >= 2 steps
    # ("parallel" axis -> both v7x TensorCores get rows).  Ragged last block is
    # handled by Pallas (no wrapper-side jnp.pad / extra HBM pass over x).
    n_r = _round_up(max(n, 1), 8)
    tm_eff = min(_round_up(max(tm, 8), 8), n_r)
    if n_r > tm_eff or n_r >= 512:
        tm_eff = min(tm_eff, _round_up(-(-n_r // 2), 8))
    grid_m = pl.cdiv(max(n, 1), tm_eff)

    # MXU operands in bf16 (full-rate on all generations); lin_in and all biases
    # stay f32 and are added to the f32 accumulator / residual stream.
    w_in_f = w_in.astype(jnp.float32)
    b_in_f = b_in.astype(jnp.float32)
    w0_c = w0.astype(weight_dtype)
    w1_c = w1.astype(weight_dtype)
    w_out_c = w_out.astype(weight_dtype)
    b0_f = b0.astype(jnp.float32)
    b1_f = b1.astype(jnp.float32)
    b_out_f = b_out.astype(jnp.float32)

    kernel = functools.partial(_resnetfc_kernel, n_blocks=n_blocks,
                               relu_in_bf16=relu_in_bf16)

    out = pl.pallas_call(
        kernel,
        out_shape=jax.ShapeDtypeStruct((n, d_out), jnp.float32),
        grid_spec=pltpu.PrefetchScalarGridSpec(
            num_scalar_prefetch=0,
            grid=(grid_m,),
            in_specs=[
                pl.BlockSpec((tm_eff, d_in), lambda i: (i, 0)),               # x tile
                pl.BlockSpec((d_in, d_hidden), lambda i: (0, 0)),             # W_in (f32)
                pl.BlockSpec((1, d_hidden), lambda i: (0, 0)),                # b_in
                pl.BlockSpec((n_blocks, d_hidden, d_hidden),
                             lambda i: (0, 0, 0)),                            # W0
                pl.BlockSpec((n_blocks, 1, d_hidden), lambda i: (0, 0, 0)),   # b0
                pl.BlockSpec((n_blocks, d_hidden, d_hidden),
                             lambda i: (0, 0, 0)),                            # W1
                pl.BlockSpec((n_blocks, 1, d_hidden), lambda i: (0, 0, 0)),   # b1
                pl.BlockSpec((d_hidden, d_out), lambda i: (0, 0)),            # W_out
                pl.BlockSpec((1, d_out), lambda i: (0, 0)),                   # b_out
            ],
            out_specs=pl.BlockSpec((tm_eff, d_out), lambda i: (i, 0)),
        ),
        compiler_params=pltpu.CompilerParams(
            dimension_semantics=("parallel",)),
    )(x, w_in_f, b_in_f, w0_c, b0_f, w1_c, b1_f, w_out_c, b_out_f)

    return out.reshape(*lead_shape, d_out)


# ---------------------------------------------------------------------------
# Pure-JAX f32 reference (same semantics as the PyTorch forward)
# ---------------------------------------------------------------------------
def resnetfc_reference(zx, params):
    (w_in, b_in, w0, b0, w1, b1, w_out, b_out) = params
    x = zx @ w_in + b_in[0]
    for i in range(w0.shape[0]):
        net = jnp.maximum(x, 0.0) @ w0[i] + b0[i, 0]
        dx = jnp.maximum(net, 0.0) @ w1[i] + b1[i, 0]
        x = x + dx
    return jnp.maximum(x, 0.0) @ w_out + b_out[0]


# ---------------------------------------------------------------------------
# Deterministic parameter init (kaiming-normal-like scales; fc_1 given small
# nonzero values so the residual path is actually exercised — PyTorch init
# would zero it, which does not change forward-pass semantics).
# ---------------------------------------------------------------------------
def make_params(key, d_in, d_hidden, d_out, n_blocks):
    ks = jax.random.split(key, 6)

    def kaiming(k, fan_in, shape):
        return jax.random.normal(k, shape, jnp.float32) * jnp.sqrt(2.0 / fan_in)

    w_in = kaiming(ks[0], d_in, (d_in, d_hidden))
    b_in = jnp.zeros((1, d_hidden), jnp.float32)
    w0 = kaiming(ks[1], d_hidden, (n_blocks, d_hidden, d_hidden))
    b0 = jnp.zeros((n_blocks, 1, d_hidden), jnp.float32)
    w1 = 0.01 * kaiming(ks[2], d_hidden, (n_blocks, d_hidden, d_hidden))
    b1 = jnp.zeros((n_blocks, 1, d_hidden), jnp.float32)
    w_out = kaiming(ks[3], d_hidden, (d_hidden, d_out))
    b_out = jnp.zeros((1, d_out), jnp.float32)
    return (w_in, b_in, w0, b0, w1, b1, w_out, b_out)


# ---------------------------------------------------------------------------
if __name__ == "__main__":
    d_in, d_hidden, d_out, n_blocks = 16, 128, 4, 5

    key = jax.random.PRNGKey(0)
    k_params, k_x1, k_x2 = jax.random.split(key, 3)
    params = make_params(k_params, d_in, d_hidden, d_out, n_blocks)

    # Small case: single clamped tile (16 rows).
    zx_small = jax.random.normal(k_x1, (2, 8, d_in), jnp.float32)
    out_small = jax.block_until_ready(resnetfc_forward(zx_small, params))
    ref_small = resnetfc_reference(zx_small, params)
    assert out_small.shape == (2, 8, d_out)
    # bf16 MXU operands with f32 accumulation -> loosened tolerance vs f32 ref.
    assert jnp.allclose(out_small, ref_small, atol=5e-2, rtol=5e-2), \
        "small-case mismatch vs reference"

    # Larger case with explicit small tm: 600 rows, tm_eff=256 -> 3 grid steps
    # with a ragged (88-row) last block exercising the no-pad OOB path.
    zx_big = jax.random.normal(k_x2, (2, 300, d_in), jnp.float32)
    out_big = jax.block_until_ready(resnetfc_forward(zx_big, params, tm=256))
    ref_big = resnetfc_reference(zx_big, params)
    assert out_big.shape == (2, 300, d_out)
    assert jnp.allclose(out_big, ref_big, atol=5e-2, rtol=5e-2), \
        "multi-tile mismatch vs reference"

    # Default-tm path: n=600 >= 512 -> tile capped to 304 -> 2 balanced grid
    # steps (v7x two-TensorCore sharding path).
    out_big2 = jax.block_until_ready(resnetfc_forward(zx_big, params))
    assert jnp.allclose(out_big2, ref_big, atol=5e-2, rtol=5e-2), \
        "default-tm mismatch vs reference"

    print("KERNEL_OK")
</pallas_src>

<mosaic_0001>
module attributes {stable_mosaic.version = 11 : i64} {
  func.func @_resnetfc_kernel(%arg0: i32, %arg1: memref<16x16xf32, #tpu.memory_space<vmem>>, %arg2: memref<16x128xf32, #tpu.memory_space<vmem>>, %arg3: memref<1x128xf32, #tpu.memory_space<vmem>>, %arg4: memref<5x128x128xbf16, #tpu.memory_space<vmem>>, %arg5: memref<5x1x128xf32, #tpu.memory_space<vmem>>, %arg6: memref<5x128x128xbf16, #tpu.memory_space<vmem>>, %arg7: memref<5x1x128xf32, #tpu.memory_space<vmem>>, %arg8: memref<128x4xbf16, #tpu.memory_space<vmem>>, %arg9: memref<1x4xf32, #tpu.memory_space<vmem>>, %arg10: memref<16x4xf32, #tpu.memory_space<vmem>>) attributes {dimension_semantics = [#tpu.dimension_semantics<parallel>], iteration_bounds = array<i64: 1>, scalar_prefetch = 0 : i64, scratch_operands = 0 : i64, tpu.core_type = #tpu.core_type<tc>, window_params = [{transform_indices = @transform_0, window_bounds = array<i64: 16, 16>}, {pipeline_mode = #tpu.pipeline_mode<synchronous>, transform_indices = @transform_1, window_bounds = array<i64: 16, 128>}, {pipeline_mode = #tpu.pipeline_mode<synchronous>, transform_indices = @transform_2, window_bounds = array<i64: 1, 128>}, {pipeline_mode = #tpu.pipeline_mode<synchronous>, transform_indices = @transform_3, window_bounds = array<i64: 5, 128, 128>}, {pipeline_mode = #tpu.pipeline_mode<synchronous>, transform_indices = @transform_4, window_bounds = array<i64: 5, 1, 128>}, {pipeline_mode = #tpu.pipeline_mode<synchronous>, transform_indices = @transform_5, window_bounds = array<i64: 5, 128, 128>}, {pipeline_mode = #tpu.pipeline_mode<synchronous>, transform_indices = @transform_6, window_bounds = array<i64: 5, 1, 128>}, {pipeline_mode = #tpu.pipeline_mode<synchronous>, transform_indices = @transform_7, window_bounds = array<i64: 128, 4>}, {pipeline_mode = #tpu.pipeline_mode<synchronous>, transform_indices = @transform_8, window_bounds = array<i64: 1, 4>}, {transform_indices = @transform_9, window_bounds = array<i64: 16, 4>}]} {
    %c0 = arith.constant 0 : index
    %c0_0 = arith.constant 0 : index
    %0 = vector.load %arg1[%c0, %c0_0] : memref<16x16xf32, #tpu.memory_space<vmem>>, vector<16x16xf32>
    %c0_1 = arith.constant 0 : index
    %c0_2 = arith.constant 0 : index
    %1 = vector.load %arg2[%c0_1, %c0_2] : memref<16x128xf32, #tpu.memory_space<vmem>>, vector<16x128xf32>
    %cst = arith.constant dense<0.000000e+00> : vector<16x128xf32>
    %2 = tpu.matmul %0, %1, %cst {dimension_numbers = #tpu.dot_dimension_numbers<[1], [0], [0], [1], [0, 0, 1, 1], [], []>} : vector<16x16xf32>, vector<16x128xf32>, vector<16x128xf32> -> vector<16x128xf32>
    %c0_3 = arith.constant 0 : index
    %c0_4 = arith.constant 0 : index
    %3 = vector.load %arg3[%c0_3, %c0_4] : memref<1x128xf32, #tpu.memory_space<vmem>>, vector<1x128xf32>
    %4 = vector.broadcast %3 : vector<1x128xf32> to vector<16x128xf32>
    %5 = arith.addf %2, %4 : vector<16x128xf32>
    %cst_5 = arith.constant 0.000000e+00 : f32
    %6 = vector.broadcast %cst_5 : f32 to vector<16x128xf32>
    %7 = arith.maximumf %5, %6 : vector<16x128xf32>
    %8 = arith.truncf %7 : vector<16x128xf32> to vector<16x128xbf16>
    %c0_6 = arith.constant 0 : index
    %c0_7 = arith.constant 0 : index
    %c0_8 = arith.constant 0 : index
    %9 = vector.load %arg4[%c0_6, %c0_7, %c0_8] : memref<5x128x128xbf16, #tpu.memory_space<vmem>>, vector<1x128x128xbf16>
    %10 = vector.shape_cast %9 : vector<1x128x128xbf16> to vector<128x128xbf16>
    %cst_9 = arith.constant dense<0.000000e+00> : vector<16x128xf32>
    %11 = tpu.matmul %8, %10, %cst_9 {dimension_numbers = #tpu.dot_dimension_numbers<[1], [0], [0], [1], [0, 0, 1, 1], [], []>} : vector<16x128xbf16>, vector<128x128xbf16>, vector<16x128xf32> -> vector<16x128xf32>
    %c0_10 = arith.constant 0 : index
    %c0_11 = arith.constant 0 : index
    %c0_12 = arith.constant 0 : index
    %12 = vector.load %arg5[%c0_10, %c0_11, %c0_12] : memref<5x1x128xf32, #tpu.memory_space<vmem>>, vector<1x1x128xf32>
    %13 = vector.shape_cast %12 : vector<1x1x128xf32> to vector<1x128xf32>
    %14 = vector.broadcast %13 : vector<1x128xf32> to vector<16x128xf32>
    %15 = arith.addf %11, %14 : vector<16x128xf32>
    %cst_13 = arith.constant 0.000000e+00 : f32
    %16 = vector.broadcast %cst_13 : f32 to vector<16x128xf32>
    %17 = arith.maximumf %15, %16 : vector<16x128xf32>
    %18 = arith.truncf %17 : vector<16x128xf32> to vector<16x128xbf16>
    %c0_14 = arith.constant 0 : index
    %c0_15 = arith.constant 0 : index
    %c0_16 = arith.constant 0 : index
    %19 = vector.load %arg6[%c0_14, %c0_15, %c0_16] : memref<5x128x128xbf16, #tpu.memory_space<vmem>>, vector<1x128x128xbf16>
    %20 = vector.shape_cast %19 : vector<1x128x128xbf16> to vector<128x128xbf16>
    %cst_17 = arith.constant dense<0.000000e+00> : vector<16x128xf32>
    %21 = tpu.matmul %18, %20, %cst_17 {dimension_numbers = #tpu.dot_dimension_numbers<[1], [0], [0], [1], [0, 0, 1, 1], [], []>} : vector<16x128xbf16>, vector<128x128xbf16>, vector<16x128xf32> -> vector<16x128xf32>
    %c0_18 = arith.constant 0 : index
    %c0_19 = arith.constant 0 : index
    %c0_20 = arith.constant 0 : index
    %22 = vector.load %arg7[%c0_18, %c0_19, %c0_20] : memref<5x1x128xf32, #tpu.memory_space<vmem>>, vector<1x1x128xf32>
    %23 = vector.shape_cast %22 : vector<1x1x128xf32> to vector<1x128xf32>
    %24 = vector.broadcast %23 : vector<1x128xf32> to vector<16x128xf32>
    %25 = arith.addf %21, %24 : vector<16x128xf32>
    %26 = arith.addf %5, %25 : vector<16x128xf32>
    %cst_21 = arith.constant 0.000000e+00 : f32
    %27 = vector.broadcast %cst_21 : f32 to vector<16x128xf32>
    %28 = arith.maximumf %26, %27 : vector<16x128xf32>
    %29 = arith.truncf %28 : vector<16x128xf32> to vector<16x128xbf16>
    %c1 = arith.constant 1 : index
    %c0_22 = arith.constant 0 : index
    %c0_23 = arith.constant 0 : index
    %30 = vector.load %arg4[%c1, %c0_22, %c0_23] : memref<5x128x128xbf16, #tpu.memory_space<vmem>>, vector<1x128x128xbf16>
    %31 = vector.shape_cast %30 : vector<1x128x128xbf16> to vector<128x128xbf16>
    %cst_24 = arith.constant dense<0.000000e+00> : vector<16x128xf32>
    %32 = tpu.matmul %29, %31, %cst_24 {dimension_numbers = #tpu.dot_dimension_numbers<[1], [0], [0], [1], [0, 0, 1, 1], [], []>} : vector<16x128xbf16>, vector<128x128xbf16>, vector<16x128xf32> -> vector<16x128xf32>
    %c1_25 = arith.constant 1 : index
    %c0_26 = arith.constant 0 : index
    %c0_27 = arith.constant 0 : index
    %33 = vector.load %arg5[%c1_25, %c0_26, %c0_27] : memref<5x1x128xf32, #tpu.memory_space<vmem>>, vector<1x1x128xf32>
    %34 = vector.shape_cast %33 : vector<1x1x128xf32> to vector<1x128xf32>
    %35 = vector.broadcast %34 : vector<1x128xf32> to vector<16x128xf32>
    %36 = arith.addf %32, %35 : vector<16x128xf32>
    %cst_28 = arith.constant 0.000000e+00 : f32
    %37 = vector.broadcast %cst_28 : f32 to vector<16x128xf32>
    %38 = arith.maximumf %36, %37 : vector<16x128xf32>
    %39 = arith.truncf %38 : vector<16x128xf32> to vector<16x128xbf16>
    %c1_29 = arith.constant 1 : index
    %c0_30 = arith.constant 0 : index
    %c0_31 = arith.constant 0 : index
    %40 = vector.load %arg6[%c1_29, %c0_30, %c0_31] : memref<5x128x128xbf16, #tpu.memory_space<vmem>>, vector<1x128x128xbf16>
    %41 = vector.shape_cast %40 : vector<1x128x128xbf16> to vector<128x128xbf16>
    %cst_32 = arith.constant dense<0.000000e+00> : vector<16x128xf32>
    %42 = tpu.matmul %39, %41, %cst_32 {dimension_numbers = #tpu.dot_dimension_numbers<[1], [0], [0], [1], [0, 0, 1, 1], [], []>} : vector<16x128xbf16>, vector<128x128xbf16>, vector<16x128xf32> -> vector<16x128xf32>
    %c1_33 = arith.constant 1 : index
    %c0_34 = arith.constant 0 : index
    %c0_35 = arith.constant 0 : index
    %43 = vector.load %arg7[%c1_33, %c0_34, %c0_35] : memref<5x1x128xf32, #tpu.memory_space<vmem>>, vector<1x1x128xf32>
    %44 = vector.shape_cast %43 : vector<1x1x128xf32> to vector<1x128xf32>
    %45 = vector.broadcast %44 : vector<1x128xf32> to vector<16x128xf32>
    %46 = arith.addf %42, %45 : vector<16x128xf32>
    %47 = arith.addf %26, %46 : vector<16x128xf32>
    %cst_36 = arith.constant 0.000000e+00 : f32
    %48 = vector.broadcast %cst_36 : f32 to vector<16x128xf32>
    %49 = arith.maximumf %47, %48 : vector<16x128xf32>
    %50 = arith.truncf %49 : vector<16x128xf32> to vector<16x128xbf16>
    %c2 = arith.constant 2 : index
    %c0_37 = arith.constant 0 : index
    %c0_38 = arith.constant 0 : index
    %51 = vector.load %arg4[%c2, %c0_37, %c0_38] : memref<5x128x128xbf16, #tpu.memory_space<vmem>>, vector<1x128x128xbf16>
    %52 = vector.shape_cast %51 : vector<1x128x128xbf16> to vector<128x128xbf16>
    %cst_39 = arith.constant dense<0.000000e+00> : vector<16x128xf32>
    %53 = tpu.matmul %50, %52, %cst_39 {dimension_numbers = #tpu.dot_dimension_numbers<[1], [0], [0], [1], [0, 0, 1, 1], [], []>} : vector<16x128xbf16>, vector<128x128xbf16>, vector<16x128xf32> -> vector<16x128xf32>
    %c2_40 = arith.constant 2 : index
    %c0_41 = arith.constant 0 : index
    %c0_42 = arith.constant 0 : index
    %54 = vector.load %arg5[%c2_40, %c0_41, %c0_42] : memref<5x1x128xf32, #tpu.memory_space<vmem>>, vector<1x1x128xf32>
    %55 = vector.shape_cast %54 : vector<1x1x128xf32> to vector<1x128xf32>
    %56 = vector.broadcast %55 : vector<1x128xf32> to vector<16x128xf32>
    %57 = arith.addf %53, %56 : vector<16x128xf32>
    %cst_43 = arith.constant 0.000000e+00 : f32
    %58 = vector.broadcast %cst_43 : f32 to vector<16x128xf32>
    %59 = arith.maximumf %57, %58 : vector<16x128xf32>
    %60 = arith.truncf %59 : vector<16x128xf32> to vector<16x128xbf16>
    %c2_44 = arith.constant 2 : index
    %c0_45 = arith.constant 0 : index
    %c0_46 = arith.constant 0 : index
    %61 = vector.load %arg6[%c2_44, %c0_45, %c0_46] : memref<5x128x128xbf16, #tpu.memory_space<vmem>>, vector<1x128x128xbf16>
    %62 = vector.shape_cast %61 : vector<1x128x128xbf16> to vector<128x128xbf16>
    %cst_47 = arith.constant dense<0.000000e+00> : vector<16x128xf32>
    %63 = tpu.matmul %60, %62, %cst_47 {dimension_numbers = #tpu.dot_dimension_numbers<[1], [0], [0], [1], [0, 0, 1, 1], [], []>} : vector<16x128xbf16>, vector<128x128xbf16>, vector<16x128xf32> -> vector<16x128xf32>
    %c2_48 = arith.constant 2 : index
    %c0_49 = arith.constant 0 : index
    %c0_50 = arith.constant 0 : index
    %64 = vector.load %arg7[%c2_48, %c0_49, %c0_50] : memref<5x1x128xf32, #tpu.memory_space<vmem>>, vector<1x1x128xf32>
    %65 = vector.shape_cast %64 : vector<1x1x128xf32> to vector<1x128xf32>
    %66 = vector.broadcast %65 : vector<1x128xf32> to vector<16x128xf32>
    %67 = arith.addf %63, %66 : vector<16x128xf32>
    %68 = arith.addf %47, %67 : vector<16x128xf32>
    %cst_51 = arith.constant 0.000000e+00 : f32
    %69 = vector.broadcast %cst_51 : f32 to vector<16x128xf32>
    %70 = arith.maximumf %68, %69 : vector<16x128xf32>
    %71 = arith.truncf %70 : vector<16x128xf32> to vector<16x128xbf16>
    %c3 = arith.constant 3 : index
    %c0_52 = arith.constant 0 : index
    %c0_53 = arith.constant 0 : index
    %72 = vector.load %arg4[%c3, %c0_52, %c0_53] : memref<5x128x128xbf16, #tpu.memory_space<vmem>>, vector<1x128x128xbf16>
    %73 = vector.shape_cast %72 : vector<1x128x128xbf16> to vector<128x128xbf16>
    %cst_54 = arith.constant dense<0.000000e+00> : vector<16x128xf32>
    %74 = tpu.matmul %71, %73, %cst_54 {dimension_numbers = #tpu.dot_dimension_numbers<[1], [0], [0], [1], [0, 0, 1, 1], [], []>} : vector<16x128xbf16>, vector<128x128xbf16>, vector<16x128xf32> -> vector<16x128xf32>
    %c3_55 = arith.constant 3 : index
    %c0_56 = arith.constant 0 : index
    %c0_57 = arith.constant 0 : index
    %75 = vector.load %arg5[%c3_55, %c0_56, %c0_57] : memref<5x1x128xf32, #tpu.memory_space<vmem>>, vector<1x1x128xf32>
    %76 = vector.shape_cast %75 : vector<1x1x128xf32> to vector<1x128xf32>
    %77 = vector.broadcast %76 : vector<1x128xf32> to vector<16x128xf32>
    %78 = arith.addf %74, %77 : vector<16x128xf32>
    %cst_58 = arith.constant 0.000000e+00 : f32
    %79 = vector.broadcast %cst_58 : f32 to vector<16x128xf32>
    %80 = arith.maximumf %78, %79 : vector<16x128xf32>
    %81 = arith.truncf %80 : vector<16x128xf32> to vector<16x128xbf16>
    %c3_59 = arith.constant 3 : index
    %c0_60 = arith.constant 0 : index
    %c0_61 = arith.constant 0 : index
    %82 = vector.load %arg6[%c3_59, %c0_60, %c0_61] : memref<5x128x128xbf16, #tpu.memory_space<vmem>>, vector<1x128x128xbf16>
    %83 = vector.shape_cast %82 : vector<1x128x128xbf16> to vector<128x128xbf16>
    %cst_62 = arith.constant dense<0.000000e+00> : vector<16x128xf32>
    %84 = tpu.matmul %81, %83, %cst_62 {dimension_numbers = #tpu.dot_dimension_numbers<[1], [0], [0], [1], [0, 0, 1, 1], [], []>} : vector<16x128xbf16>, vector<128x128xbf16>, vector<16x128xf32> -> vector<16x128xf32>
    %c3_63 = arith.constant 3 : index
    %c0_64 = arith.constant 0 : index
    %c0_65 = arith.constant 0 : index
    %85 = vector.load %arg7[%c3_63, %c0_64, %c0_65] : memref<5x1x128xf32, #tpu.memory_space<vmem>>, vector<1x1x128xf32>
    %86 = vector.shape_cast %85 : vector<1x1x128xf32> to vector<1x128xf32>
    %87 = vector.broadcast %86 : vector<1x128xf32> to vector<16x128xf32>
    %88 = arith.addf %84, %87 : vector<16x128xf32>
    %89 = arith.addf %68, %88 : vector<16x128xf32>
    %cst_66 = arith.constant 0.000000e+00 : f32
    %90 = vector.broadcast %cst_66 : f32 to vector<16x128xf32>
    %91 = arith.maximumf %89, %90 : vector<16x128xf32>
    %92 = arith.truncf %91 : vector<16x128xf32> to vector<16x128xbf16>
    %c4 = arith.constant 4 : index
    %c0_67 = arith.constant 0 : index
    %c0_68 = arith.constant 0 : index
    %93 = vector.load %arg4[%c4, %c0_67, %c0_68] : memref<5x128x128xbf16, #tpu.memory_space<vmem>>, vector<1x128x128xbf16>
    %94 = vector.shape_cast %93 : vector<1x128x128xbf16> to vector<128x128xbf16>
    %cst_69 = arith.constant dense<0.000000e+00> : vector<16x128xf32>
    %95 = tpu.matmul %92, %94, %cst_69 {dimension_numbers = #tpu.dot_dimension_numbers<[1], [0], [0], [1], [0, 0, 1, 1], [], []>} : vector<16x128xbf16>, vector<128x128xbf16>, vector<16x128xf32> -> vector<16x128xf32>
    %c4_70 = arith.constant 4 : index
    %c0_71 = arith.constant 0 : index
    %c0_72 = arith.constant 0 : index
    %96 = vector.load %arg5[%c4_70, %c0_71, %c0_72] : memref<5x1x128xf32, #tpu.memory_space<vmem>>, vector<1x1x128xf32>
    %97 = vector.shape_cast %96 : vector<1x1x128xf32> to vector<1x128xf32>
    %98 = vector.broadcast %97 : vector<1x128xf32> to vector<16x128xf32>
    %99 = arith.addf %95, %98 : vector<16x128xf32>
    %cst_73 = arith.constant 0.000000e+00 : f32
    %100 = vector.broadcast %cst_73 : f32 to vector<16x128xf32>
    %101 = arith.maximumf %99, %100 : vector<16x128xf32>
    %102 = arith.truncf %101 : vector<16x128xf32> to vector<16x128xbf16>
    %c4_74 = arith.constant 4 : index
    %c0_75 = arith.constant 0 : index
    %c0_76 = arith.constant 0 : index
    %103 = vector.load %arg6[%c4_74, %c0_75, %c0_76] : memref<5x128x128xbf16, #tpu.memory_space<vmem>>, vector<1x128x128xbf16>
    %104 = vector.shape_cast %103 : vector<1x128x128xbf16> to vector<128x128xbf16>
    %cst_77 = arith.constant dense<0.000000e+00> : vector<16x128xf32>
    %105 = tpu.matmul %102, %104, %cst_77 {dimension_numbers = #tpu.dot_dimension_numbers<[1], [0], [0], [1], [0, 0, 1, 1], [], []>} : vector<16x128xbf16>, vector<128x128xbf16>, vector<16x128xf32> -> vector<16x128xf32>
    %c4_78 = arith.constant 4 : index
    %c0_79 = arith.constant 0 : index
    %c0_80 = arith.constant 0 : index
    %106 = vector.load %arg7[%c4_78, %c0_79, %c0_80] : memref<5x1x128xf32, #tpu.memory_space<vmem>>, vector<1x1x128xf32>
    %107 = vector.shape_cast %106 : vector<1x1x128xf32> to vector<1x128xf32>
    %108 = vector.broadcast %107 : vector<1x128xf32> to vector<16x128xf32>
    %109 = arith.addf %105, %108 : vector<16x128xf32>
    %110 = arith.addf %89, %109 : vector<16x128xf32>
    %cst_81 = arith.constant 0.000000e+00 : f32
    %111 = vector.broadcast %cst_81 : f32 to vector<16x128xf32>
    %112 = arith.maximumf %110, %111 : vector<16x128xf32>
    %113 = arith.truncf %112 : vector<16x128xf32> to vector<16x128xbf16>
    %c0_82 = arith.constant 0 : index
    %c0_83 = arith.constant 0 : index
    %114 = vector.load %arg8[%c0_82, %c0_83] : memref<128x4xbf16, #tpu.memory_space<vmem>>, vector<128x4xbf16>
    %cst_84 = arith.constant dense<0.000000e+00> : vector<16x4xf32>
    %115 = tpu.matmul %113, %114, %cst_84 {dimension_numbers = #tpu.dot_dimension_numbers<[1], [0], [0], [1], [0, 0, 1, 1], [], []>} : vector<16x128xbf16>, vector<128x4xbf16>, vector<16x4xf32> -> vector<16x4xf32>
    %c0_85 = arith.constant 0 : index
    %c0_86 = arith.constant 0 : index
    %116 = vector.load %arg9[%c0_85, %c0_86] : memref<1x4xf32, #tpu.memory_space<vmem>>, vector<1x4xf32>
    %117 = vector.broadcast %116 : vector<1x4xf32> to vector<16x4xf32>
    %118 = arith.addf %115, %117 : vector<16x4xf32>
    %c0_87 = arith.constant 0 : index
    %c0_88 = arith.constant 0 : index
    %119 = vector.load %arg10[%c0_87, %c0_88] : memref<16x4xf32, #tpu.memory_space<vmem>>, vector<16x4xf32>
    tpu.vector_store %arg10[%c0_87, %c0_88], %118 {strides = array<i32>} : memref<16x4xf32, #tpu.memory_space<vmem>>, vector<16x4xf32>,
    return
  }
  func.func @transform_0(%arg0: i32) -> (i32, i32) {
    %c0_i32 = arith.constant 0 : i32
    %c0_i32_0 = arith.constant 0 : i32
    return %arg0, %c0_i32 : i32, i32
  }
  func.func @transform_1(%arg0: i32) -> (i32, i32) {
    %c0_i32 = arith.constant 0 : i32
    %c0_i32_0 = arith.constant 0 : i32
    %c0_i32_1 = arith.constant 0 : i32
    return %c0_i32, %c0_i32_0 : i32, i32
  }
  func.func @transform_2(%arg0: i32) -> (i32, i32) {
    %c0_i32 = arith.constant 0 : i32
    %c0_i32_0 = arith.constant 0 : i32
    %c0_i32_1 = arith.constant 0 : i32
    return %c0_i32, %c0_i32_0 : i32, i32
  }
  func.func @transform_3(%arg0: i32) -> (i32, i32, i32) {
    %c0_i32 = arith.constant 0 : i32
    %c0_i32_0 = arith.constant 0 : i32
    %c0_i32_1 = arith.constant 0 : i32
    %c0_i32_2 = arith.constant 0 : i32
    return %c0_i32, %c0_i32_0, %c0_i32_1 : i32, i32, i32
  }
  func.func @transform_4(%arg0: i32) -> (i32, i32, i32) {
    %c0_i32 = arith.constant 0 : i32
    %c0_i32_0 = arith.constant 0 : i32
    %c0_i32_1 = arith.constant 0 : i32
    %c0_i32_2 = arith.constant 0 : i32
    return %c0_i32, %c0_i32_0, %c0_i32_1 : i32, i32, i32
  }
  func.func @transform_5(%arg0: i32) -> (i32, i32, i32) {
    %c0_i32 = arith.constant 0 : i32
    %c0_i32_0 = arith.constant 0 : i32
    %c0_i32_1 = arith.constant 0 : i32
    %c0_i32_2 = arith.constant 0 : i32
    return %c0_i32, %c0_i32_0, %c0_i32_1 : i32, i32, i32
  }
  func.func @transform_6(%arg0: i32) -> (i32, i32, i32) {
    %c0_i32 = arith.constant 0 : i32
    %c0_i32_0 = arith.constant 0 : i32
    %c0_i32_1 = arith.constant 0 : i32
    %c0_i32_2 = arith.constant 0 : i32
    return %c0_i32, %c0_i32_0, %c0_i32_1 : i32, i32, i32
  }
  func.func @transform_7(%arg0: i32) -> (i32, i32) {
    %c0_i32 = arith.constant 0 : i32
    %c0_i32_0 = arith.constant 0 : i32
    %c0_i32_1 = arith.constant 0 : i32
    return %c0_i32, %c0_i32_0 : i32, i32
  }
  func.func @transform_8(%arg0: i32) -> (i32, i32) {
    %c0_i32 = arith.constant 0 : i32
    %c0_i32_0 = arith.constant 0 : i32
    %c0_i32_1 = arith.constant 0 : i32
    return %c0_i32, %c0_i32_0 : i32, i32
  }
  func.func @transform_9(%arg0: i32) -> (i32, i32) {
    %c0_i32 = arith.constant 0 : i32
    %c0_i32_0 = arith.constant 0 : i32
    return %arg0, %c0_i32 : i32, i32
  }
}

</mosaic_0001>

<bundles_post_ra>
// kernel: tpu_custom_call.1
= control target key start
LH: loop header
LB: loop body
LE: loop exit
PB: predicated region body
PF: predicated region fallthrough
CT: control target
= control target key end

     0   :  { %14 = vsyncpa [#allocation3], 0  ;;  %s2314_s0 = inlined_call_operand.vmem [shape: f32[16,16], index: 0, kind: input, shape index: {}]   ;;  %s2315_s1 = inlined_call_operand.vmem [shape: f32[16,128], index: 1, kind: input, shape index: {}]   ;;  %s2316_s2 = inlined_call_operand.vmem [shape: f32[1,128], index: 2, kind: input, shape index: {}]   ;;  %s2317_s3 = inlined_call_operand.hbm [shape: bf16[5,128,128], index: 3, kind: input, shape index: {}]   ;;  %s2318_s4 = inlined_call_operand.vmem [shape: f32[5,1,128], index: 4, kind: input, shape index: {}]   ;;  %s2319_s5 = inlined_call_operand.hbm [shape: bf16[5,128,128], index: 5, kind: input, shape index: {}]   ;;  %s2320_s6 = inlined_call_operand.vmem [shape: f32[5,1,128], index: 6, kind: input, shape index: {}]   ;;  %s2321_s7 = inlined_call_operand.vmem [shape: bf16[128,4], index: 7, kind: input, shape index: {}]   ;;  %s2322_s8 = inlined_call_operand.vmem [shape: f32[1,4], index: 8, kind: input, shape index: {}]   ;;  %s2323_s9 = inlined_call_operand.vmem [shape: f32[16,4], index: 9, kind: output, shape index: {}]  }
   0x1   :  { %15 = vsyncpa [#allocation5], 0  ;;  %s2032_s30 = smov [#allocation2]  }
   0x2   :  { %s27_s10 = sshll.u32 %s2032_s30, 4  ;;  %s28_s10 = int_to_ptr.vmem [resolvable:$true] %s27_s10 }
   0x3   :  { %s1996_s11 = scalar_lea.vmem %s28_s10, 5120  ;;  %p2001_p1 = scmp.lt.s32.totalorder %s28_s10, %s28_s10 }
   0x4   :  { %p1997_p0 = scmp.ne.s32.totalorder %s28_s10, %s1996_s11  ;;  %p2002_p2 = scmp.lt.s32.totalorder %s1996_s11, %s1996_s11 }
   0x6   :  { %p2003_p3 = por %p2002_p2, %p2001_p1 }
   0x8   :  { %p2004_p4 = pnand %p2003_p3, %p1997_p0 }
   0xa   :  { %2007 = shalt.err (!%p2004_p4)
}
   0xb   :  { %s2033_s12 = smov 64   ;;  %s2034_s13 = smov 4  }
   0xc   :  { %33 = dma.hbm_to_vmem [thread:$0]  %s2317_s3, 5120, %s28_s10, [#allocation3], %s2033_s12, %s2033_s12, %s2034_s13  }
   0xd   :  { %s2035_s16 = smov [#allocation4]  }
   0xe   :  { %s41_s17 = sshll.u32 %s2035_s16, 4  ;;  %s42_s17 = int_to_ptr.vmem [resolvable:$true] %s41_s17 }
   0xf   :  { %s2016_s18 = scalar_lea.vmem %s42_s17, 5120  ;;  %p2021_p6 = scmp.lt.s32.totalorder %s42_s17, %s42_s17 }
  0x10   :  { %p2017_p5 = scmp.ne.s32.totalorder %s42_s17, %s2016_s18  ;;  %p2022_p7 = scmp.lt.s32.totalorder %s2016_s18, %s2016_s18 }
  0x12   :  { %p2023_p8 = por %p2022_p7, %p2021_p6 }
  0x14   :  { %p2024_p9 = pnand %p2023_p8, %p2017_p5 }
  0x16   :  { %2027 = shalt.err (!%p2024_p9)
}
  0x17   :  { %47 = dma.hbm_to_vmem [thread:$0]  %s2319_s5, 5120, %s42_s17, [#allocation5], %s2033_s12, %s2033_s12, %s2034_s13  }
  0x18   :  { %2028 = dma.done.wait [#allocation3], 5120  }
  0x19   :  { %2029 = vsyncadd [#allocation3], 4294962176 }
  0x1a   :  { %2030 = dma.done.wait [#allocation5], 5120  }
  0x1b   :  { %2031 = vsyncadd [#allocation5], 4294962176  ;;  %v2036_v0 = vmov 0.0   ;;  %vm72_vm0 = vcmask 130048   ;;  %v64_v1 = vld [vmem:[%s2315_s1 + $0x8] sm:$0xff]  ;;  %v63_v2 = vld [vmem:[%s2315_s1] sm:$0xff] }
  0x1c   :  { %1674 = vmatprep.subr.bf16.mxu1 %v2036_v0  ;;  %v61_v3 = vld [vmem:[%s2314_s0] sm:$0xff]  ;;  %1667 = vmatprep.subr.mxu0 %v64_v1  ;;  %v62_v4 = vld [vmem:[%s2314_s0 + $0x8] sm:$0xff]  ;;  %v1900_v5 = vld [vmem:[#allocation2 + $0x38] sm:$0xff]   ;;  %vm2037_vm1 = vmmov 0   ;;  %vm1445_vm2 = vcmask 31744  }
  0x1d   :  { %1671 = vmatprep.mubr.msk.f32.mxu0 %vm72_vm0, %v61_v3  ;;  %1668 = vmatpush3.msra.mxu0 %v64_v1  ;;  %v1901_v6 = vld [vmem:[#allocation2 + $0x30] sm:$0xff]   ;;  %v1902_v7 = vld [vmem:[#allocation2 + $0x28] sm:$0xff]   ;;  %v1903_v8 = vld [vmem:[#allocation2 + $0x20] sm:$0xff]  }
  0x1e   :  { %1669 = vmatprep.subr.mxu0 %v63_v2  ;;  %1675 = vmatpush3.bf16.msra.mxu1 %v1900_v5  ;;  %v1904_v9 = vld [vmem:[#allocation2 + $0x18] sm:$0xff]   ;;  %v1905_v10 = vld [vmem:[#allocation2 + $0x10] sm:$0xff]   ;;  %v1906_v11 = vld [vmem:[#allocation2 + $0x8] sm:$0xff]  }
  0x1f   :  { %1670 = vmatpush3.msra.mxu0 %v63_v2  ;;  %1676 = vmatprep.subr.bf16.mxu1 %v2036_v0  ;;  %v1907_v12 = vld [vmem:[#allocation2] sm:$0xff]   ;;  %v1908_v13 = vld [vmem:[#allocation4 + $0x38] sm:$0xff]   ;;  %v1909_v14 = vld [vmem:[#allocation4 + $0x30] sm:$0xff]  }
  0x20   :  { %1672 = vmatmul.mubr.msk.f32.vlgmr.msra.gmra.mxu0 %vm72_vm0, %v62_v4  ;;  %1694 = vmatprep.subr.bf16.mxu0 %v2036_v0  ;;  %v1910_v15 = vld [vmem:[#allocation4 + $0x28] sm:$0xff]   ;;  %v1911_v16 = vld [vmem:[#allocation4 + $0x20] sm:$0xff]   ;;  %v1912_v17 = vld [vmem:[#allocation4 + $0x18] sm:$0xff]  }
  0x21   :  { %1690 = vmatprep.mubr.msk.bf16.mxu1 %vm2037_vm1, %v2036_v0  ;;  %1710 = vmatprep.mubr.msk.bf16.mxu0 %vm2037_vm1, %v2036_v0  ;;  %v1454_v18 = vld [vmem:[%s2316_s2] ss:$0 sm:$0xff]  ;;  %v1913_v26 = vld [vmem:[#allocation4 + $0x10] sm:$0xff]   ;;  %v1914_v27 = vld [vmem:[#allocation4 + $0x8] sm:$0xff]  }
  0x22   :  { %1677 = vmatpush3.bf16.msra.mxu1 %v1901_v6  ;;  %1695 = vmatpush3.bf16.msra.mxu0 %v1908_v13  ;;  %v1915_v28 = vld [vmem:[#allocation4] sm:$0xff]   ;;  %v1916_v29 = vld [vmem:[#allocation2 + $0x78] sm:$0xff]   ;;  %v1917_v30 = vld [vmem:[#allocation2 + $0x70] sm:$0xff]  }
  0x23   :  { %1678 = vmatprep.subr.bf16.mxu1 %v2036_v0  ;;  %1696 = vmatprep.subr.bf16.mxu0 %v2036_v0  ;;  %v1918_v31 = vld [vmem:[#allocation2 + $0x68] sm:$0xff]   ;;  %v1919_v32 = vld [vmem:[#allocation2 + $0x60] sm:$0xff]   ;;  %v1920_v33 = vld [vmem:[#allocation2 + $0x58] sm:$0xff]  }
  0x24   :  { %v1457_v34 = vld [vmem:[%s2318_s4] ss:$0 sm:$0xff]  ;;  %v1921_v44 = vld [vmem:[#allocation2 + $0x50] sm:$0xff]   ;;  %v1922_v45 = vld [vmem:[#allocation2 + $0x48] sm:$0xff]  }
  0x25   :  { %v1923_v46 = vld [vmem:[#allocation2 + $0x40] sm:$0xff]   ;;  %v1924_v47 = vld [vmem:[#allocation4 + $0x78] sm:$0xff]   ;;  %v1925_v48 = vld [vmem:[#allocation4 + $0x70] sm:$0xff]  }
  0x26   :  { %1679 = vmatpush3.bf16.msra.mxu1 %v1902_v7  ;;  %1697 = vmatpush3.bf16.msra.mxu0 %v1909_v14  ;;  %v1926_v49 = vld [vmem:[#allocation4 + $0x68] sm:$0xff]   ;;  %v1927_v50 = vld [vmem:[#allocation4 + $0x60] sm:$0xff]   ;;  %v1928_v51 = vld [vmem:[#allocation4 + $0x58] sm:$0xff]  }
  0x27   :  { %1680 = vmatprep.subr.bf16.mxu1 %v2036_v0  ;;  %1698 = vmatprep.subr.bf16.mxu0 %v2036_v0  ;;  %v1466_v52 = vld [vmem:[%s2320_s6] ss:$0 sm:$0xff]  ;;  %v1929_v1 = vld [vmem:[#allocation4 + $0x50] sm:$0xff]   ;;  %v1930_v2 = vld [vmem:[#allocation4 + $0x48] sm:$0xff]  }
  0x28   :  { %v1931_v3 = vld [vmem:[#allocation4 + $0x40] sm:$0xff]   ;;  %v1932_v4 = vld [vmem:[#allocation2 + $0xb8] sm:$0xff]   ;;  %v1933_v5 = vld [vmem:[#allocation2 + $0xb0] sm:$0xff]  }
  0x29   :  { %v1934_v6 = vld [vmem:[#allocation2 + $0xa8] sm:$0xff]   ;;  %v1935_v7 = vld [vmem:[#allocation2 + $0xa0] sm:$0xff]  }
  0x2a   :  { %1681 = vmatpush3.bf16.msra.mxu1 %v1903_v8  ;;  %1699 = vmatpush3.bf16.msra.mxu0 %v1910_v15  ;;  %v1936_v8 = vld [vmem:[#allocation2 + $0x98] sm:$0xff]  }
  0x2b   :  { %1682 = vmatprep.subr.bf16.mxu1 %v2036_v0  ;;  %1700 = vmatprep.subr.bf16.mxu0 %v2036_v0 }
  0x2e   :  { %1683 = vmatpush3.bf16.msra.mxu1 %v1904_v9  ;;  %1701 = vmatpush3.bf16.msra.mxu0 %v1911_v16  ;;  %v1476_v9 = vld [vmem:[%s2318_s4 + $0x1] ss:$0 sm:$0xff] }
  0x2f   :  { %1684 = vmatprep.subr.bf16.mxu1 %v2036_v0  ;;  %1702 = vmatprep.subr.bf16.mxu0 %v2036_v0 }
  0x32   :  { %1685 = vmatpush3.bf16.msra.mxu1 %v1905_v10  ;;  %1703 = vmatpush3.bf16.msra.mxu0 %v1912_v17 }
  0x33   :  { %1686 = vmatprep.subr.bf16.mxu1 %v2036_v0  ;;  %1704 = vmatprep.subr.bf16.mxu0 %v2036_v0 }
  0x36   :  { %1687 = vmatpush3.bf16.msra.mxu1 %v1906_v11  ;;  %1705 = vmatpush3.bf16.msra.mxu0 %v1913_v26  ;;  %v1944_v26 = vld [vmem:[#allocation4 + $0x98] sm:$0xff]  }
  0x37   :  { %1688 = vmatprep.subr.bf16.mxu1 %v2036_v0  ;;  %1706 = vmatprep.subr.bf16.mxu0 %v2036_v0 }
  0x3a   :  { %1689 = vmatpush3.bf16.msra.mxu1 %v1907_v12  ;;  %1707 = vmatpush3.bf16.msra.mxu0 %v1914_v27  ;;  %v1486_v27 = vld [vmem:[%s2320_s6 + $0x1] ss:$0 sm:$0xff] }
  0x3b   :  { %1714 = vmatprep.subr.bf16.mxu1 %v2036_v0  ;;  %1708 = vmatprep.subr.bf16.mxu0 %v2036_v0 }
  0x3e   :  { %1709 = vmatpush3.bf16.msra.mxu0 %v1915_v28 }
  0x3f   :  { %1734 = vmatprep.subr.bf16.mxu0 %v2036_v0 }
  0xe0   :  { %v1673_v19 = vpop.f32.mrf.mxu0 }
  0xe1   :  { %v2128_v20 = vadd.f32 %v1673_v19, %v1454_v18  ;;  %v1937_v19 = vld [vmem:[#allocation2 + $0x90] sm:$0xff]  }
  0xe2   :  { %v145_v21 = vpop.f32.mrf.mxu0 }
  0xe3   :  { %v2130_v22 = vadd.f32 %v1454_v18, %v145_v21  ;;  %v155_v23 = vmax.f32 %v2128_v20, 0.0  ;;  %v1939_v21 = vld [vmem:[#allocation2 + $0x80] sm:$0xff]  }
  0xe5   :  { %v154_v24 = vmax.f32 %v2130_v22, 0.0 }
  0xe7   :  { %v156_v25 = vpack.c.bf16 %v155_v23, %v154_v24  ;;  %v1941_v23 = vld [vmem:[#allocation4 + $0xb0] sm:$0xff]   ;;  %v1942_v24 = vld [vmem:[#allocation4 + $0xa8] sm:$0xff]  }
  0xe9   :  { %1691 = vmatmul.mubr.bf16.vlgmr.msra.gmra.mxu1 %v156_v25  ;;  %v1943_v25 = vld [vmem:[#allocation4 + $0xa0] sm:$0xff]  }
  0xea   :  { %1730 = vmatprep.mubr.msk.bf16.mxu1 %vm2037_vm1, %v2036_v0  ;;  %1715 = vmatpush3.bf16.msra.mxu1 %v1916_v29 }
  0xeb   :  { %1716 = vmatprep.subr.bf16.mxu1 %v2036_v0 }
  0xee   :  { %1717 = vmatpush3.bf16.msra.mxu1 %v1917_v30 }
  0xef   :  { %1718 = vmatprep.subr.bf16.mxu1 %v2036_v0 }
  0xf2   :  { %1719 = vmatpush3.bf16.msra.mxu1 %v1918_v31 }
  0xf3   :  { %1720 = vmatprep.subr.bf16.mxu1 %v2036_v0 }
  0xf6   :  { %1721 = vmatpush3.bf16.msra.mxu1 %v1919_v32 }
  0xf7   :  { %1722 = vmatprep.subr.bf16.mxu1 %v2036_v0 }
  0xfa   :  { %1723 = vmatpush3.bf16.msra.mxu1 %v1920_v33 }
  0xfb   :  { %1724 = vmatprep.subr.bf16.mxu1 %v2036_v0 }
  0xfe   :  { %1725 = vmatpush3.bf16.msra.mxu1 %v1921_v44  ;;  %v1950_v44 = vld [vmem:[#allocation2 + $0xe8] sm:$0xff]  }
  0xff   :  { %1726 = vmatprep.subr.bf16.mxu1 %v2036_v0 }
 0x102   :  { %1727 = vmatpush3.bf16.msra.mxu1 %v1922_v45  ;;  %v1951_v45 = vld [vmem:[#allocation2 + $0xe0] sm:$0xff]  }
 0x103   :  { %1728 = vmatprep.subr.bf16.mxu1 %v2036_v0 }
 0x106   :  { %1729 = vmatpush3.bf16.msra.mxu1 %v1923_v46  ;;  %v1952_v46 = vld [vmem:[#allocation2 + $0xd8] sm:$0xff]  }
 0x107   :  { %1754 = vmatprep.subr.bf16.mxu1 %v2036_v0 }
 0x1a9   :  { %v262_v35 = vpop.f32.mrf.mxu1 }
 0x1aa   :  { %v263_v37 = vadd.f32 %v1457_v34, %v262_v35 }
 0x1ab   :  { %v1692_v36 = vpop.f32.mrf.mxu1 }
 0x1ac   :  { %v269_v41 = vmax.f32 %v263_v37, 0.0 }
 0x1ad   :  { %v265_v38 = vpop.f32.mrf.mxu1 }
 0x1ae   :  { %v266_v39 = vadd.f32 %v1457_v34, %v265_v38 }
 0x1af   :  { %v1693_v40 = vpop.f32.mrf.mxu1 }
 0x1b0   :  { %v270_v42 = vmax.f32 %v266_v39, 0.0  ;;  %v1945_v39 = vld [vmem:[#allocation4 + $0x90] sm:$0xff]   ;;  %v1946_v40 = vld [vmem:[#allocation4 + $0x88] sm:$0xff]  }
 0x1b2   :  { %v271_v43 = vpack.c.bf16 %v270_v42, %v269_v41  ;;  %v1947_v41 = vld [vmem:[#allocation4 + $0x80] sm:$0xff]   ;;  %v1948_v42 = vld [vmem:[#allocation2 + $0xf8] sm:$0xff]  }
 0x1b4   :  { %1711 = vmatmul.mubr.bf16.vlgmr.msra.gmra.mxu0 %v271_v43  ;;  %v1949_v43 = vld [vmem:[#allocation2 + $0xf0] sm:$0xff]  }
 0x1b5   :  { %1750 = vmatprep.mubr.msk.bf16.mxu0 %vm2037_vm1, %v2036_v0  ;;  %1735 = vmatpush3.bf16.msra.mxu0 %v1924_v47  ;;  %v1496_v47 = vld [vmem:[%s2318_s4 + $0x2] ss:$0 sm:$0xff] }
 0x1b6   :  { %1736 = vmatprep.subr.bf16.mxu0 %v2036_v0 }
 0x1b9   :  { %1737 = vmatpush3.bf16.msra.mxu0 %v1925_v48 }
 0x1ba   :  { %1738 = vmatprep.subr.bf16.mxu0 %v2036_v0 }
 0x1bd   :  { %1739 = vmatpush3.bf16.msra.mxu0 %v1926_v49 }
 0x1be   :  { %1740 = vmatprep.subr.bf16.mxu0 %v2036_v0 }
 0x1c1   :  { %1741 = vmatpush3.bf16.msra.mxu0 %v1927_v50 }
 0x1c2   :  { %1742 = vmatprep.subr.bf16.mxu0 %v2036_v0 }
 0x1c5   :  { %1743 = vmatpush3.bf16.msra.mxu0 %v1928_v51 }
 0x1c6   :  { %1744 = vmatprep.subr.bf16.mxu0 %v2036_v0 }
 0x1c9   :  { %1745 = vmatpush3.bf16.msra.mxu0 %v1929_v1  ;;  %v1960_v1 = vld [vmem:[#allocation4 + $0xd8] sm:$0xff]  }
 0x1ca   :  { %1746 = vmatprep.subr.bf16.mxu0 %v2036_v0 }
 0x1cd   :  { %1747 = vmatpush3.bf16.msra.mxu0 %v1930_v2  ;;  %v1506_v2 = vld [vmem:[%s2320_s6 + $0x2] ss:$0 sm:$0xff] }
 0x1ce   :  { %1748 = vmatprep.subr.bf16.mxu0 %v2036_v0 }
 0x1d1   :  { %1749 = vmatpush3.bf16.msra.mxu0 %v1931_v3 }
 0x1d2   :  { %1774 = vmatprep.subr.bf16.mxu0 %v2036_v0 }
 0x274   :  { %v377_v53 = vpop.f32.mrf.mxu0 }
 0x275   :  { %v378_v54 = vadd.f32 %v1466_v52, %v377_v53 }
 0x276   :  { %v1712_v55 = vpop.f32.mrf.mxu0 }
 0x277   :  { %v2161_v57 = vadd.f32 %v378_v54, %v2130_v22  ;;  %v1940_v22 = vld [vmem:[#allocation4 + $0xb8] sm:$0xff]  }
 0x278   :  { %v380_v56 = vpop.f32.mrf.mxu0 }
 0x279   :  { %v381_v58 = vadd.f32 %v1466_v52, %v380_v56  ;;  %v386_v61 = vmax.f32 %v2161_v57, 0.0 }
 0x27a   :  { %v1713_v59 = vpop.f32.mrf.mxu0 }
 0x27b   :  { %v2164_v60 = vadd.f32 %v381_v58, %v2128_v20  ;;  %v1938_v20 = vld [vmem:[#allocation2 + $0x88] sm:$0xff]   ;;  %v1955_v59 = vld [vmem:[#allocation2 + $0xc0] sm:$0xff]  }
 0x27c   :  { %v1954_v58 = vld [vmem:[#allocation2 + $0xc8] sm:$0xff]  }
 0x27d   :  { %v387_v62 = vmax.f32 %v2164_v60, 0.0 }
 0x27f   :  { %v388_v63 = vpack.c.bf16 %v387_v62, %v386_v61  ;;  %v1957_v61 = vld [vmem:[#allocation4 + $0xf0] sm:$0xff]   ;;  %v1958_v62 = vld [vmem:[#allocation4 + $0xe8] sm:$0xff]  }
 0x281   :  { %1731 = vmatmul.mubr.bf16.vlgmr.msra.gmra.mxu1 %v388_v63  ;;  %v1959_v63 = vld [vmem:[#allocation4 + $0xe0] sm:$0xff]  }
 0x282   :  { %1770 = vmatprep.mubr.msk.bf16.mxu1 %vm2037_vm1, %v2036_v0  ;;  %1755 = vmatpush3.bf16.msra.mxu1 %v1932_v4 }
 0x283   :  { %1756 = vmatprep.subr.bf16.mxu1 %v2036_v0 }
 0x286   :  { %1757 = vmatpush3.bf16.msra.mxu1 %v1933_v5 }
 0x287   :  { %1758 = vmatprep.subr.bf16.mxu1 %v2036_v0 }
 0x28a   :  { %1759 = vmatpush3.bf16.msra.mxu1 %v1934_v6 }
 0x28b   :  { %1760 = vmatprep.subr.bf16.mxu1 %v2036_v0 }
 0x28e   :  { %1761 = vmatpush3.bf16.msra.mxu1 %v1935_v7 }
 0x28f   :  { %1762 = vmatprep.subr.bf16.mxu1 %v2036_v0 }
 0x292   :  { %1763 = vmatpush3.bf16.msra.mxu1 %v1936_v8 }
 0x293   :  { %1764 = vmatprep.subr.bf16.mxu1 %v2036_v0 }
 0x296   :  { %1765 = vmatpush3.bf16.msra.mxu1 %v1937_v19  ;;  %v1966_v19 = vld [vmem:[#allocation2 + $0x128] sm:$0xff]  }
 0x297   :  { %1766 = vmatprep.subr.bf16.mxu1 %v2036_v0 }
 0x29a   :  { %1767 = vmatpush3.bf16.msra.mxu1 %v1938_v20  ;;  %v1967_v20 = vld [vmem:[#allocation2 + $0x120] sm:$0xff]  }
 0x29b   :  { %1768 = vmatprep.subr.bf16.mxu1 %v2036_v0 }
 0x29e   :  { %1769 = vmatpush3.bf16.msra.mxu1 %v1939_v21  ;;  %v1968_v21 = vld [vmem:[#allocation2 + $0x118] sm:$0xff]  }
 0x29f   :  { %1794 = vmatprep.subr.bf16.mxu1 %v2036_v0 }
 0x341   :  { %v496_v10 = vpop.f32.mrf.mxu1 }
 0x342   :  { %v497_v12 = vadd.f32 %v1476_v9, %v496_v10 }
 0x343   :  { %v1732_v11 = vpop.f32.mrf.mxu1 }
 0x344   :  { %v503_v16 = vmax.f32 %v497_v12, 0.0 }
 0x345   :  { %v499_v13 = vpop.f32.mrf.mxu1 }
 0x346   :  { %v500_v14 = vadd.f32 %v1476_v9, %v499_v13 }
 0x347   :  { %v1733_v15 = vpop.f32.mrf.mxu1 }
 0x348   :  { %v504_v17 = vmax.f32 %v500_v14, 0.0  ;;  %v1961_v14 = vld [vmem:[#allocation4 + $0xd0] sm:$0xff]   ;;  %v1962_v15 = vld [vmem:[#allocation4 + $0xc8] sm:$0xff]  }
 0x34a   :  { %v505_v18 = vpack.c.bf16 %v504_v17, %v503_v16  ;;  %v1963_v16 = vld [vmem:[#allocation4 + $0xc0] sm:$0xff]   ;;  %v1964_v17 = vld [vmem:[#allocation2 + $0x138] sm:$0xff]  }
 0x34c   :  { %1751 = vmatmul.mubr.bf16.vlgmr.msra.gmra.mxu0 %v505_v18  ;;  %v1965_v18 = vld [vmem:[#allocation2 + $0x130] sm:$0xff]  }
 0x34d   :  { %1790 = vmatprep.mubr.msk.bf16.mxu0 %vm2037_vm1, %v2036_v0  ;;  %1775 = vmatpush3.bf16.msra.mxu0 %v1940_v22  ;;  %v1516_v22 = vld [vmem:[%s2318_s4 + $0x3] ss:$0 sm:$0xff] }
 0x34e   :  { %1776 = vmatprep.subr.bf16.mxu0 %v2036_v0 }
 0x351   :  { %1777 = vmatpush3.bf16.msra.mxu0 %v1941_v23 }
 0x352   :  { %1778 = vmatprep.subr.bf16.mxu0 %v2036_v0 }
 0x355   :  { %1779 = vmatpush3.bf16.msra.mxu0 %v1942_v24 }
 0x356   :  { %1780 = vmatprep.subr.bf16.mxu0 %v2036_v0 }
 0x359   :  { %1781 = vmatpush3.bf16.msra.mxu0 %v1943_v25 }
 0x35a   :  { %1782 = vmatprep.subr.bf16.mxu0 %v2036_v0 }
 0x35d   :  { %1783 = vmatpush3.bf16.msra.mxu0 %v1944_v26 }
 0x35e   :  { %1784 = vmatprep.subr.bf16.mxu0 %v2036_v0 }
 0x361   :  { %1785 = vmatpush3.bf16.msra.mxu0 %v1945_v39  ;;  %v1976_v39 = vld [vmem:[#allocation4 + $0x118] sm:$0xff]  }
 0x362   :  { %1786 = vmatprep.subr.bf16.mxu0 %v2036_v0 }
 0x365   :  { %1787 = vmatpush3.bf16.msra.mxu0 %v1946_v40  ;;  %v1526_v40 = vld [vmem:[%s2320_s6 + $0x3] ss:$0 sm:$0xff] }
 0x366   :  { %1788 = vmatprep.subr.bf16.mxu0 %v2036_v0 }
 0x369   :  { %1789 = vmatpush3.bf16.msra.mxu0 %v1947_v41 }
 0x36a   :  { %1814 = vmatprep.subr.bf16.mxu0 %v2036_v0 }
 0x40c   :  { %v613_v28 = vpop.f32.mrf.mxu0 }
 0x40d   :  { %v614_v29 = vadd.f32 %v1486_v27, %v613_v28 }
 0x40e   :  { %v1752_v30 = vpop.f32.mrf.mxu0 }
 0x40f   :  { %v2195_v32 = vadd.f32 %v614_v29, %v2161_v57  ;;  %v1953_v57 = vld [vmem:[#allocation2 + $0xd0] sm:$0xff]  }
 0x410   :  { %v616_v31 = vpop.f32.mrf.mxu0 }
 0x411   :  { %v617_v33 = vadd.f32 %v1486_v27, %v616_v31  ;;  %v622_v36 = vmax.f32 %v2195_v32, 0.0 }
 0x412   :  { %v1753_v34 = vpop.f32.mrf.mxu0 }
 0x413   :  { %v2198_v35 = vadd.f32 %v617_v33, %v2164_v60  ;;  %v1956_v60 = vld [vmem:[#allocation4 + $0xf8] sm:$0xff]   ;;  %v1970_v33 = vld [vmem:[#allocation2 + $0x108] sm:$0xff]   ;;  %v1971_v34 = vld [vmem:[#allocation2 + $0x100] sm:$0xff]  }
 0x415   :  { %v623_v37 = vmax.f32 %v2198_v35, 0.0 }
 0x417   :  { %v624_v38 = vpack.c.bf16 %v623_v37, %v622_v36  ;;  %v1973_v36 = vld [vmem:[#allocation4 + $0x130] sm:$0xff]   ;;  %v1974_v37 = vld [vmem:[#allocation4 + $0x128] sm:$0xff]  }
 0x419   :  { %1771 = vmatmul.mubr.bf16.vlgmr.msra.gmra.mxu1 %v624_v38  ;;  %v1975_v38 = vld [vmem:[#allocation4 + $0x120] sm:$0xff]  }
 0x41a   :  { %1810 = vmatprep.mubr.msk.bf16.mxu1 %vm2037_vm1, %v2036_v0  ;;  %1795 = vmatpush3.bf16.msra.mxu1 %v1948_v42 }
 0x41b   :  { %1796 = vmatprep.subr.bf16.mxu1 %v2036_v0 }
 0x41e   :  { %1797 = vmatpush3.bf16.msra.mxu1 %v1949_v43 }
 0x41f   :  { %1798 = vmatprep.subr.bf16.mxu1 %v2036_v0 }
 0x422   :  { %1799 = vmatpush3.bf16.msra.mxu1 %v1950_v44 }
 0x423   :  { %1800 = vmatprep.subr.bf16.mxu1 %v2036_v0 }
 0x426   :  { %1801 = vmatpush3.bf16.msra.mxu1 %v1951_v45 }
 0x427   :  { %1802 = vmatprep.subr.bf16.mxu1 %v2036_v0 }
 0x42a   :  { %1803 = vmatpush3.bf16.msra.mxu1 %v1952_v46 }
 0x42b   :  { %1804 = vmatprep.subr.bf16.mxu1 %v2036_v0 }
 0x42e   :  { %1805 = vmatpush3.bf16.msra.mxu1 %v1953_v57  ;;  %v1982_v57 = vld [vmem:[%s2321_s7 + $0x28] sm:$0xff]  }
 0x42f   :  { %1806 = vmatprep.subr.bf16.mxu1 %v2036_v0 }
 0x432   :  { %1807 = vmatpush3.bf16.msra.mxu1 %v1954_v58  ;;  %v1983_v58 = vld [vmem:[%s2321_s7 + $0x20] sm:$0xff]  }
 0x433   :  { %1808 = vmatprep.subr.bf16.mxu1 %v2036_v0 }
 0x436   :  { %1809 = vmatpush3.bf16.msra.mxu1 %v1955_v59  ;;  %v1984_v59 = vld [vmem:[%s2321_s7 + $0x18] sm:$0xff]  }
 0x437   :  { %1834 = vmatprep.subr.bf16.mxu1 %v2036_v0 }
 0x4d9   :  { %v732_v48 = vpop.f32.mrf.mxu1 }
 0x4da   :  { %v733_v50 = vadd.f32 %v1496_v47, %v732_v48 }
 0x4db   :  { %v1772_v49 = vpop.f32.mrf.mxu1 }
 0x4dc   :  { %v739_v54 = vmax.f32 %v733_v50, 0.0 }
 0x4dd   :  { %v735_v51 = vpop.f32.mrf.mxu1 }
 0x4de   :  { %v736_v52 = vadd.f32 %v1496_v47, %v735_v51 }
 0x4df   :  { %v1773_v53 = vpop.f32.mrf.mxu1 }
 0x4e0   :  { %v740_v55 = vmax.f32 %v736_v52, 0.0  ;;  %v1977_v52 = vld [vmem:[#allocation4 + $0x110] sm:$0xff]   ;;  %v1978_v53 = vld [vmem:[#allocation4 + $0x108] sm:$0xff]  }
 0x4e2   :  { %v741_v56 = vpack.c.bf16 %v740_v55, %v739_v54  ;;  %v1979_v54 = vld [vmem:[#allocation4 + $0x100] sm:$0xff]   ;;  %v1980_v55 = vld [vmem:[%s2321_s7 + $0x38] sm:$0xff]  }
 0x4e4   :  { %1791 = vmatmul.mubr.bf16.vlgmr.msra.gmra.mxu0 %v741_v56  ;;  %v1981_v56 = vld [vmem:[%s2321_s7 + $0x30] sm:$0xff]  }
 0x4e5   :  { %1830 = vmatprep.mubr.msk.bf16.mxu0 %vm2037_vm1, %v2036_v0  ;;  %1815 = vmatpush3.bf16.msra.mxu0 %v1956_v60  ;;  %v1536_v60 = vld [vmem:[%s2318_s4 + $0x4] ss:$0 sm:$0xff] }
 0x4e6   :  { %1816 = vmatprep.subr.bf16.mxu0 %v2036_v0 }
 0x4e9   :  { %1817 = vmatpush3.bf16.msra.mxu0 %v1957_v61 }
 0x4ea   :  { %1818 = vmatprep.subr.bf16.mxu0 %v2036_v0 }
 0x4ed   :  { %1819 = vmatpush3.bf16.msra.mxu0 %v1958_v62 }
 0x4ee   :  { %1820 = vmatprep.subr.bf16.mxu0 %v2036_v0 }
 0x4f1   :  { %1821 = vmatpush3.bf16.msra.mxu0 %v1959_v63 }
 0x4f2   :  { %1822 = vmatprep.subr.bf16.mxu0 %v2036_v0 }
 0x4f5   :  { %1823 = vmatpush3.bf16.msra.mxu0 %v1960_v1 }
 0x4f6   :  { %1824 = vmatprep.subr.bf16.mxu0 %v2036_v0 }
 0x4f9   :  { %1825 = vmatpush3.bf16.msra.mxu0 %v1961_v14 }
 0x4fa   :  { %1826 = vmatprep.subr.bf16.mxu0 %v2036_v0 }
 0x4fd   :  { %1827 = vmatpush3.bf16.msra.mxu0 %v1962_v15 }
 0x4fe   :  { %1828 = vmatprep.subr.bf16.mxu0 %v2036_v0 }
 0x501   :  { %1829 = vmatpush3.bf16.msra.mxu0 %v1963_v16 }
 0x502   :  { %1854 = vmatprep.subr.bf16.mxu0 %v2036_v0 }
 0x5a4   :  { %v849_v3 = vpop.f32.mrf.mxu0 }
 0x5a5   :  { %v850_v4 = vadd.f32 %v1506_v2, %v849_v3 }
 0x5a6   :  { %v1792_v5 = vpop.f32.mrf.mxu0 }
 0x5a7   :  { %v2229_v7 = vadd.f32 %v850_v4, %v2195_v32  ;;  %v1969_v32 = vld [vmem:[#allocation2 + $0x110] sm:$0xff]  }
 0x5a8   :  { %v852_v6 = vpop.f32.mrf.mxu0 }
 0x5a9   :  { %v853_v8 = vadd.f32 %v1506_v2, %v852_v6  ;;  %v858_v11 = vmax.f32 %v2229_v7, 0.0 }
 0x5aa   :  { %v1793_v9 = vpop.f32.mrf.mxu0 }
 0x5ab   :  { %v2232_v10 = vadd.f32 %v853_v8, %v2198_v35  ;;  %v1972_v35 = vld [vmem:[#allocation4 + $0x138] sm:$0xff]   ;;  %v1986_v8 = vld [vmem:[%s2321_s7 + $0x8] sm:$0xff]   ;;  %v1987_v9 = vld [vmem:[%s2321_s7] sm:$0xff]  }
 0x5ad   :  { %v859_v12 = vmax.f32 %v2232_v10, 0.0 }
 0x5af   :  { %v860_v13 = vpack.c.bf16 %v859_v12, %v858_v11 }
 0x5b1   :  { %1811 = vmatmul.mubr.bf16.vlgmr.msra.gmra.mxu1 %v860_v13 }
 0x5b2   :  { %1850 = vmatprep.mubr.msk.bf16.mxu1 %vm2037_vm1, %v2036_v0  ;;  %1835 = vmatpush3.bf16.msra.mxu1 %v1964_v17 }
 0x5b3   :  { %1836 = vmatprep.subr.bf16.mxu1 %v2036_v0 }
 0x5b6   :  { %1837 = vmatpush3.bf16.msra.mxu1 %v1965_v18 }
 0x5b7   :  { %1838 = vmatprep.subr.bf16.mxu1 %v2036_v0 }
 0x5ba   :  { %1839 = vmatpush3.bf16.msra.mxu1 %v1966_v19 }
 0x5bb   :  { %1840 = vmatprep.subr.bf16.mxu1 %v2036_v0 }
 0x5be   :  { %1841 = vmatpush3.bf16.msra.mxu1 %v1967_v20 }
 0x5bf   :  { %1842 = vmatprep.subr.bf16.mxu1 %v2036_v0 }
 0x5c2   :  { %1843 = vmatpush3.bf16.msra.mxu1 %v1968_v21  ;;  %v1555_v21 = vld [vmem:[%s2322_s8] ss:$0 sm:$0xff] }
 0x5c3   :  { %1844 = vmatprep.subr.bf16.mxu1 %v2036_v0 }
 0x5c6   :  { %1845 = vmatpush3.bf16.msra.mxu1 %v1969_v32 }
 0x5c7   :  { %1846 = vmatprep.subr.bf16.mxu1 %v2036_v0 }
 0x5ca   :  { %1847 = vmatpush3.bf16.msra.mxu1 %v1970_v33 }
 0x5cb   :  { %1848 = vmatprep.subr.bf16.mxu1 %v2036_v0 }
 0x5ce   :  { %1849 = vmatpush3.bf16.msra.mxu1 %v1971_v34 }
 0x5cf   :  { %1874 = vmatprep.subr.bf16.mxu1 %v2036_v0 }
 0x671   :  { %v968_v23 = vpop.f32.mrf.mxu1 }
 0x672   :  { %v969_v25 = vadd.f32 %v1516_v22, %v968_v23 }
 0x673   :  { %v1812_v24 = vpop.f32.mrf.mxu1 }
 0x674   :  { %v975_v29 = vmax.f32 %v969_v25, 0.0 }
 0x675   :  { %v971_v26 = vpop.f32.mrf.mxu1 }
 0x676   :  { %v972_v27 = vadd.f32 %v1516_v22, %v971_v26 }
 0x677   :  { %v1813_v28 = vpop.f32.mrf.mxu1 }
 0x678   :  { %v976_v30 = vmax.f32 %v972_v27, 0.0 }
 0x67a   :  { %v977_v31 = vpack.c.bf16 %v976_v30, %v975_v29 }
 0x67c   :  { %1831 = vmatmul.mubr.bf16.vlgmr.msra.gmra.mxu0 %v977_v31 }
 0x67d   :  { %1870 = vmatprep.mubr.msk.bf16.mxu0 %vm2037_vm1, %v2036_v0  ;;  %1855 = vmatpush3.bf16.msra.mxu0 %v1972_v35 }
 0x67e   :  { %1856 = vmatprep.subr.bf16.mxu0 %v2036_v0 }
 0x681   :  { %1857 = vmatpush3.bf16.msra.mxu0 %v1973_v36 }
 0x682   :  { %1858 = vmatprep.subr.bf16.mxu0 %v2036_v0 }
 0x685   :  { %1859 = vmatpush3.bf16.msra.mxu0 %v1974_v37 }
 0x686   :  { %1860 = vmatprep.subr.bf16.mxu0 %v2036_v0 }
 0x689   :  { %1861 = vmatpush3.bf16.msra.mxu0 %v1975_v38 }
 0x68a   :  { %1862 = vmatprep.subr.bf16.mxu0 %v2036_v0 }
 0x68d   :  { %1863 = vmatpush3.bf16.msra.mxu0 %v1976_v39 }
 0x68e   :  { %1864 = vmatprep.subr.bf16.mxu0 %v2036_v0 }
 0x691   :  { %1865 = vmatpush3.bf16.msra.mxu0 %v1977_v52 }
 0x692   :  { %1866 = vmatprep.subr.bf16.mxu0 %v2036_v0 }
 0x695   :  { %1867 = vmatpush3.bf16.msra.mxu0 %v1978_v53 }
 0x696   :  { %1868 = vmatprep.subr.bf16.mxu0 %v2036_v0 }
 0x699   :  { %1869 = vmatpush3.bf16.msra.mxu0 %v1979_v54 }
 0x73c   :  { %v1085_v41 = vpop.f32.mrf.mxu0 }
 0x73d   :  { %v1086_v42 = vadd.f32 %v1526_v40, %v1085_v41 }
 0x73e   :  { %v1832_v43 = vpop.f32.mrf.mxu0 }
 0x73f   :  { %v1092_v45 = vadd.f32 %v1086_v42, %v2229_v7  ;;  %v1985_v7 = vld [vmem:[%s2321_s7 + $0x10] sm:$0xff]  }
 0x740   :  { %v1088_v44 = vpop.f32.mrf.mxu0 }
 0x741   :  { %v1089_v46 = vadd.f32 %v1526_v40, %v1088_v44  ;;  %v1094_v49 = vmax.f32 %v1092_v45, 0.0 }
 0x742   :  { %v1833_v47 = vpop.f32.mrf.mxu0 }
 0x743   :  { %v1093_v48 = vadd.f32 %v1089_v46, %v2232_v10  ;;  %v1546_v10 = vld [vmem:[%s2320_s6 + $0x4] ss:$0 sm:$0xff] }
 0x745   :  { %v1095_v50 = vmax.f32 %v1093_v48, 0.0 }
 0x747   :  { %v1096_v51 = vpack.c.bf16 %v1095_v50, %v1094_v49 }
 0x749   :  { %1851 = vmatmul.mubr.bf16.vlgmr.msra.gmra.mxu1 %v1096_v51 }
 0x74a   :  { %1890 = vmatprep.mubr.msk.bf16.mxu1 %vm2037_vm1, %v2036_v0  ;;  %1875 = vmatpush3.bf16.msra.mxu1 %v1980_v55 }
 0x74b   :  { %1876 = vmatprep.subr.bf16.mxu1 %v2036_v0 }
 0x74e   :  { %1877 = vmatpush3.bf16.msra.mxu1 %v1981_v56 }
 0x74f   :  { %1878 = vmatprep.subr.bf16.mxu1 %v2036_v0 }
 0x752   :  { %1879 = vmatpush3.bf16.msra.mxu1 %v1982_v57 }
 0x753   :  { %1880 = vmatprep.subr.bf16.mxu1 %v2036_v0 }
 0x756   :  { %1881 = vmatpush3.bf16.msra.mxu1 %v1983_v58 }
 0x757   :  { %1882 = vmatprep.subr.bf16.mxu1 %v2036_v0 }
 0x75a   :  { %1883 = vmatpush3.bf16.msra.mxu1 %v1984_v59 }
 0x75b   :  { %1884 = vmatprep.subr.bf16.mxu1 %v2036_v0 }
 0x75e   :  { %1885 = vmatpush3.bf16.msra.mxu1 %v1985_v7 }
 0x75f   :  { %1886 = vmatprep.subr.bf16.mxu1 %v2036_v0 }
 0x762   :  { %1887 = vmatpush3.bf16.msra.mxu1 %v1986_v8 }
 0x763   :  { %1888 = vmatprep.subr.bf16.mxu1 %v2036_v0 }
 0x766   :  { %1889 = vmatpush3.bf16.msra.mxu1 %v1987_v9 }
 0x809   :  { %v1204_v61 = vpop.f32.mrf.mxu1 }
 0x80a   :  { %v1205_v63 = vadd.f32 %v1536_v60, %v1204_v61 }
 0x80b   :  { %v1852_v62 = vpop.f32.mrf.mxu1 }
 0x80c   :  { %v1211_v4 = vmax.f32 %v1205_v63, 0.0 }
 0x80d   :  { %v1207_v1 = vpop.f32.mrf.mxu1 }
 0x80e   :  { %v1208_v2 = vadd.f32 %v1536_v60, %v1207_v1 }
 0x80f   :  { %v1853_v3 = vpop.f32.mrf.mxu1 }
 0x810   :  { %v1212_v5 = vmax.f32 %v1208_v2, 0.0 }
 0x812   :  { %v1213_v6 = vpack.c.bf16 %v1212_v5, %v1211_v4 }
 0x814   :  { %1871 = vmatmul.mubr.bf16.vlgmr.msra.gmra.mxu0 %v1213_v6 }
 0x8d4   :  { %v1321_v11 = vpop.f32.mrf.mxu0 }
 0x8d5   :  { %v1322_v12 = vadd.f32 %v1546_v10, %v1321_v11 }
 0x8d6   :  { %v1872_v13 = vpop.f32.mrf.mxu0 }
 0x8d7   :  { %v1328_v15 = vadd.f32 %v1322_v12, %v1092_v45 }
 0x8d8   :  { %v1324_v14 = vpop.f32.mrf.mxu0 }
 0x8d9   :  { %v1325_v16 = vadd.f32 %v1546_v10, %v1324_v14  ;;  %v1330_v19 = vmax.f32 %v1328_v15, 0.0 }
 0x8da   :  { %v1873_v17 = vpop.f32.mrf.mxu0 }
 0x8db   :  { %v1329_v18 = vadd.f32 %v1325_v16, %v1093_v48 }
 0x8dd   :  { %v1331_v20 = vmax.f32 %v1329_v18, 0.0 }
 0x8df   :  { %v1332_v0 = vpack.c.bf16 %v1331_v20, %v1330_v19 }
 0x8e1   :  { %1891 = vmatmul.mubr.bf16.vlgmr.msra.gmra.mxu1 %v1332_v0 }
 0x9a1   :  { %v1438_v22 = vpop.f32.mrf.mxu1 }
 0x9a2   :  { %v1439_v23 = vadd.f32 %v1555_v21, %v1438_v22 }
 0x9a3   :  { %v1892_v24 = vpop.f32.mrf.mxu1 }
 0x9a4   :  { %1446 = vst.msk [vmem:[%s2323_s9] sm:$0xff] %vm1445_vm2, %v1439_v23 }
 0x9a5   :  { %v1441_v25 = vpop.f32.mrf.mxu1 }
 0x9a6   :  { %v1442_v26 = vadd.f32 %v1555_v21, %v1441_v25 }
 0x9a7   :  { %v1893_v27 = vpop.f32.mrf.mxu1 }
 0x9a8   :  { %1447 = vst.msk [vmem:[%s2323_s9 + $0x8] sm:$0xff] %vm1445_vm2, %v1442_v26 }
 0x9a9   :  { %1452 = vsyncpa [#allocation3], 1 }
 0x9aa   :  { %1453 = vsyncpa [#allocation5], 1 }

</bundles_post_ra>
